<compile_context>
chip_gen: v5e
topology: v5e:2x2
jax: 0.10.0
libtpu: 0.0.40
codegen_flags: <defaults>
</compile_context>

<pallas_src>
import jax
import jax.numpy as jnp
from jax.experimental import pallas as pl
from jax.experimental.pallas import tpu as pltpu


def _outconv_kernel(w_ref, b_ref, x_ref, o_ref):
    # w_ref: SMEM (Cout*Cin,) f32; b_ref: SMEM (Cout,) f32
    # x_ref: VMEM (1, Cin, R, 128); o_ref: VMEM (1, Cout, R, 128)
    cin = x_ref.shape[1]
    cout = o_ref.shape[1]

    # Load each input channel once as a dense (R, 128) slab in f32.
    xs = [x_ref[0, ci].astype(jnp.float32) for ci in range(cin)]

    # Tiny static loops -> VPU broadcast-FMAs; one fused expression per output
    # channel stored directly (no concatenate, no accumulator traffic).
    for co in range(cout):
        acc = b_ref[co] + w_ref[co * cin] * xs[0]
        for ci in range(1, cin):
            acc = acc + w_ref[co * cin + ci] * xs[ci]
        o_ref[0, co] = acc.astype(o_ref.dtype)


def _pick_row_tile(r_total, n_batch, cin, cout, itemsize):
    """Rows (of 128 lanes) per grid step: multiple of 8, MiB-scale, VMEM-safe."""
    # Keep double-buffered (x + out) tiles under ~12 MiB regardless of dtype.
    bytes_per_row = 2 * (cin + cout) * 128 * itemsize
    max_r_budget = max(8, (12 * 1024 * 1024) // bytes_per_row)

    r = min(1024, max_r_budget, ((r_total + 7) // 8) * 8)
    r = max(8, (r // 8) * 8)

    # Keep at least 2 total grid steps when possible (v7x: 2 TensorCores/chip).
    while n_batch * pl.cdiv(r_total, r) < 2 and r > 8:
        r = max(8, ((r // 2 + 7) // 8) * 8)
    return r


@jax.jit
def outconv_pallas(x_nchw, weight, bias):
    """1x1 conv (PyTorch OutConv). x: (N,Cin,H,W); weight: (Cout,Cin,1,1); bias: (Cout,)."""
    N, Cin, H, W = x_nchw.shape
    Cout = weight.shape[0]
    HW = H * W
    itemsize = jnp.dtype(x_nchw.dtype).itemsize

    # Params as flat f32 scalars in SMEM (32-bit scalar space).
    w1 = weight.reshape(Cout * Cin).astype(jnp.float32)
    b1 = bias.reshape(Cout).astype(jnp.float32)

    # Lay out the spatial axis as (rows, 128) lane-dense slabs.
    r_total = pl.cdiv(HW, 128)
    r_tile = _pick_row_tile(r_total, N, Cin, Cout, itemsize)
    n_tiles = pl.cdiv(r_total, r_tile)
    r_pad = n_tiles * r_tile
    hw_pad = r_pad * 128

    x3 = x_nchw.reshape(N, Cin, HW)                       # free reshape
    if hw_pad != HW:
        x3 = jnp.pad(x3, ((0, 0), (0, 0), (0, hw_pad - HW)))
    x4 = x3.reshape(N, Cin, r_pad, 128)                   # free reshape

    grid = (N, n_tiles)

    out4 = pl.pallas_call(
        _outconv_kernel,
        out_shape=jax.ShapeDtypeStruct((N, Cout, r_pad, 128), x_nchw.dtype),
        grid=grid,
        in_specs=[
            pl.BlockSpec(memory_space=pltpu.MemorySpace.SMEM),           # weight
            pl.BlockSpec(memory_space=pltpu.MemorySpace.SMEM),           # bias
            pl.BlockSpec((1, Cin, r_tile, 128), lambda n, t: (n, 0, t, 0)),
        ],
        out_specs=pl.BlockSpec((1, Cout, r_tile, 128), lambda n, t: (n, 0, t, 0)),
        compiler_params=pltpu.CompilerParams(
            dimension_semantics=("parallel", "parallel"),
            vmem_limit_bytes=32 * 1024 * 1024,   # > v5e 16 MiB default; safe on v6e/v7x
        ),
        cost_estimate=pl.CostEstimate(
            flops=2 * N * HW * Cin * Cout,
            transcendentals=0,
            bytes_accessed=(N * Cin * HW + N * Cout * HW) * itemsize
                           + (w1.size + b1.size) * 4),
    )(w1, b1, x4)

    out3 = out4.reshape(N, Cout, hw_pad)
    if hw_pad != HW:
        out3 = out3[:, :, :HW]
    return out3.reshape(N, Cout, H, W)


if __name__ == "__main__":
    # Small shapes consistent with OutConv(in_channels=4, out_channels=3)
    N, Cin, Cout, H, W = 2, 4, 3, 16, 16

    key = jax.random.PRNGKey(0)
    kx, kw, kb = jax.random.split(key, 3)

    x = jax.random.normal(kx, (N, Cin, H, W), dtype=jnp.float32)
    # PyTorch Conv2d parameter shapes: (Cout, Cin, 1, 1) and (Cout,)
    weight = jax.random.normal(kw, (Cout, Cin, 1, 1), dtype=jnp.float32) * 0.1
    bias = jax.random.normal(kb, (Cout,), dtype=jnp.float32) * 0.1

    out = outconv_pallas(x, weight, bias)
    jax.block_until_ready(out)

    # Reference check in plain JAX (einsum == 1x1 conv)
    ref = jnp.einsum("nchw,oc->nohw", x, weight.reshape(Cout, Cin)) + bias[None, :, None, None]
    assert out.shape == (N, Cout, H, W)
    assert jnp.allclose(out, ref, atol=1e-5, rtol=1e-5)

    print("KERNEL_OK")
</pallas_src>

<mosaic_0001>
module attributes {stable_mosaic.version = 11 : i64} {
  func.func @_outconv_kernel(%arg0: i32, %arg1: i32, %arg2: memref<12xf32, #tpu.memory_space<smem>>, %arg3: memref<3xf32, #tpu.memory_space<smem>>, %arg4: memref<1x4x8x128xf32, #tpu.memory_space<vmem>>, %arg5: memref<1x3x8x128xf32, #tpu.memory_space<vmem>>) attributes {dimension_semantics = [#tpu.dimension_semantics<parallel>, #tpu.dimension_semantics<parallel>], iteration_bounds = array<i64: 2, 1>, scalar_prefetch = 0 : i64, scratch_operands = 0 : i64, tpu.core_type = #tpu.core_type<tc>, window_params = [{transform_indices = @transform_0, window_bounds = array<i64: 12>}, {transform_indices = @transform_1, window_bounds = array<i64: 3>}, {transform_indices = @transform_2, window_bounds = array<i64: 1, 4, 8, 128>}, {transform_indices = @transform_3, window_bounds = array<i64: 1, 3, 8, 128>}]} {
    %c0 = arith.constant 0 : index
    %c0_0 = arith.constant 0 : index
    %c0_1 = arith.constant 0 : index
    %c0_2 = arith.constant 0 : index
    %0 = vector.load %arg4[%c0, %c0_0, %c0_1, %c0_2] : memref<1x4x8x128xf32, #tpu.memory_space<vmem>>, vector<1x1x8x128xf32>
    %1 = vector.shape_cast %0 : vector<1x1x8x128xf32> to vector<8x128xf32>
    %c0_3 = arith.constant 0 : index
    %c1 = arith.constant 1 : index
    %c0_4 = arith.constant 0 : index
    %c0_5 = arith.constant 0 : index
    %2 = vector.load %arg4[%c0_3, %c1, %c0_4, %c0_5] : memref<1x4x8x128xf32, #tpu.memory_space<vmem>>, vector<1x1x8x128xf32>
    %3 = vector.shape_cast %2 : vector<1x1x8x128xf32> to vector<8x128xf32>
    %c0_6 = arith.constant 0 : index
    %c2 = arith.constant 2 : index
    %c0_7 = arith.constant 0 : index
    %c0_8 = arith.constant 0 : index
    %4 = vector.load %arg4[%c0_6, %c2, %c0_7, %c0_8] : memref<1x4x8x128xf32, #tpu.memory_space<vmem>>, vector<1x1x8x128xf32>
    %5 = vector.shape_cast %4 : vector<1x1x8x128xf32> to vector<8x128xf32>
    %c0_9 = arith.constant 0 : index
    %c3 = arith.constant 3 : index
    %c0_10 = arith.constant 0 : index
    %c0_11 = arith.constant 0 : index
    %6 = vector.load %arg4[%c0_9, %c3, %c0_10, %c0_11] : memref<1x4x8x128xf32, #tpu.memory_space<vmem>>, vector<1x1x8x128xf32>
    %7 = vector.shape_cast %6 : vector<1x1x8x128xf32> to vector<8x128xf32>
    %c0_12 = arith.constant 0 : index
    %8 = memref.load %arg3[%c0_12] : memref<3xf32, #tpu.memory_space<smem>>
    %c0_13 = arith.constant 0 : index
    %9 = memref.load %arg2[%c0_13] : memref<12xf32, #tpu.memory_space<smem>>
    %10 = vector.broadcast %9 : f32 to vector<8x128xf32>
    %11 = arith.mulf %10, %1 : vector<8x128xf32>
    %12 = vector.broadcast %8 : f32 to vector<8x128xf32>
    %13 = arith.addf %12, %11 : vector<8x128xf32>
    %c1_14 = arith.constant 1 : index
    %14 = memref.load %arg2[%c1_14] : memref<12xf32, #tpu.memory_space<smem>>
    %15 = vector.broadcast %14 : f32 to vector<8x128xf32>
    %16 = arith.mulf %15, %3 : vector<8x128xf32>
    %17 = arith.addf %13, %16 : vector<8x128xf32>
    %c2_15 = arith.constant 2 : index
    %18 = memref.load %arg2[%c2_15] : memref<12xf32, #tpu.memory_space<smem>>
    %19 = vector.broadcast %18 : f32 to vector<8x128xf32>
    %20 = arith.mulf %19, %5 : vector<8x128xf32>
    %21 = arith.addf %17, %20 : vector<8x128xf32>
    %c3_16 = arith.constant 3 : index
    %22 = memref.load %arg2[%c3_16] : memref<12xf32, #tpu.memory_space<smem>>
    %23 = vector.broadcast %22 : f32 to vector<8x128xf32>
    %24 = arith.mulf %23, %7 : vector<8x128xf32>
    %25 = arith.addf %21, %24 : vector<8x128xf32>
    %c0_17 = arith.constant 0 : index
    %c0_18 = arith.constant 0 : index
    %c0_19 = arith.constant 0 : index
    %c0_20 = arith.constant 0 : index
    %26 = vector.load %arg5[%c0_17, %c0_18, %c0_19, %c0_20] : memref<1x3x8x128xf32, #tpu.memory_space<vmem>>, vector<1x1x8x128xf32>
    %27 = vector.shape_cast %26 : vector<1x1x8x128xf32> to vector<8x128xf32>
    %28 = vector.shape_cast %25 : vector<8x128xf32> to vector<1x1x8x128xf32>
    tpu.vector_store %arg5[%c0_17, %c0_18, %c0_19, %c0_20], %28 {strides = array<i32>} : memref<1x3x8x128xf32, #tpu.memory_space<vmem>>, vector<1x1x8x128xf32>,
    %c1_21 = arith.constant 1 : index
    %29 = memref.load %arg3[%c1_21] : memref<3xf32, #tpu.memory_space<smem>>
    %c4 = arith.constant 4 : index
    %30 = memref.load %arg2[%c4] : memref<12xf32, #tpu.memory_space<smem>>
    %31 = vector.broadcast %30 : f32 to vector<8x128xf32>
    %32 = arith.mulf %31, %1 : vector<8x128xf32>
    %33 = vector.broadcast %29 : f32 to vector<8x128xf32>
    %34 = arith.addf %33, %32 : vector<8x128xf32>
    %c5 = arith.constant 5 : index
    %35 = memref.load %arg2[%c5] : memref<12xf32, #tpu.memory_space<smem>>
    %36 = vector.broadcast %35 : f32 to vector<8x128xf32>
    %37 = arith.mulf %36, %3 : vector<8x128xf32>
    %38 = arith.addf %34, %37 : vector<8x128xf32>
    %c6 = arith.constant 6 : index
    %39 = memref.load %arg2[%c6] : memref<12xf32, #tpu.memory_space<smem>>
    %40 = vector.broadcast %39 : f32 to vector<8x128xf32>
    %41 = arith.mulf %40, %5 : vector<8x128xf32>
    %42 = arith.addf %38, %41 : vector<8x128xf32>
    %c7 = arith.constant 7 : index
    %43 = memref.load %arg2[%c7] : memref<12xf32, #tpu.memory_space<smem>>
    %44 = vector.broadcast %43 : f32 to vector<8x128xf32>
    %45 = arith.mulf %44, %7 : vector<8x128xf32>
    %46 = arith.addf %42, %45 : vector<8x128xf32>
    %c0_22 = arith.constant 0 : index
    %c1_23 = arith.constant 1 : index
    %c0_24 = arith.constant 0 : index
    %c0_25 = arith.constant 0 : index
    %47 = vector.load %arg5[%c0_22, %c1_23, %c0_24, %c0_25] : memref<1x3x8x128xf32, #tpu.memory_space<vmem>>, vector<1x1x8x128xf32>
    %48 = vector.shape_cast %47 : vector<1x1x8x128xf32> to vector<8x128xf32>
    %49 = vector.shape_cast %46 : vector<8x128xf32> to vector<1x1x8x128xf32>
    tpu.vector_store %arg5[%c0_22, %c1_23, %c0_24, %c0_25], %49 {strides = array<i32>} : memref<1x3x8x128xf32, #tpu.memory_space<vmem>>, vector<1x1x8x128xf32>,
    %c2_26 = arith.constant 2 : index
    %50 = memref.load %arg3[%c2_26] : memref<3xf32, #tpu.memory_space<smem>>
    %c8 = arith.constant 8 : index
    %51 = memref.load %arg2[%c8] : memref<12xf32, #tpu.memory_space<smem>>
    %52 = vector.broadcast %51 : f32 to vector<8x128xf32>
    %53 = arith.mulf %52, %1 : vector<8x128xf32>
    %54 = vector.broadcast %50 : f32 to vector<8x128xf32>
    %55 = arith.addf %54, %53 : vector<8x128xf32>
    %c9 = arith.constant 9 : index
    %56 = memref.load %arg2[%c9] : memref<12xf32, #tpu.memory_space<smem>>
    %57 = vector.broadcast %56 : f32 to vector<8x128xf32>
    %58 = arith.mulf %57, %3 : vector<8x128xf32>
    %59 = arith.addf %55, %58 : vector<8x128xf32>
    %c10 = arith.constant 10 : index
    %60 = memref.load %arg2[%c10] : memref<12xf32, #tpu.memory_space<smem>>
    %61 = vector.broadcast %60 : f32 to vector<8x128xf32>
    %62 = arith.mulf %61, %5 : vector<8x128xf32>
    %63 = arith.addf %59, %62 : vector<8x128xf32>
    %c11 = arith.constant 11 : index
    %64 = memref.load %arg2[%c11] : memref<12xf32, #tpu.memory_space<smem>>
    %65 = vector.broadcast %64 : f32 to vector<8x128xf32>
    %66 = arith.mulf %65, %7 : vector<8x128xf32>
    %67 = arith.addf %63, %66 : vector<8x128xf32>
    %c0_27 = arith.constant 0 : index
    %c2_28 = arith.constant 2 : index
    %c0_29 = arith.constant 0 : index
    %c0_30 = arith.constant 0 : index
    %68 = vector.load %arg5[%c0_27, %c2_28, %c0_29, %c0_30] : memref<1x3x8x128xf32, #tpu.memory_space<vmem>>, vector<1x1x8x128xf32>
    %69 = vector.shape_cast %68 : vector<1x1x8x128xf32> to vector<8x128xf32>
    %70 = vector.shape_cast %67 : vector<8x128xf32> to vector<1x1x8x128xf32>
    tpu.vector_store %arg5[%c0_27, %c2_28, %c0_29, %c0_30], %70 {strides = array<i32>} : memref<1x3x8x128xf32, #tpu.memory_space<vmem>>, vector<1x1x8x128xf32>,
    return
  }
  func.func @transform_0(%arg0: i32, %arg1: i32) -> i32 {
    %c0_i32 = arith.constant 0 : i32
    %c0_i32_0 = arith.constant 0 : i32
    return %c0_i32 : i32
  }
  func.func @transform_1(%arg0: i32, %arg1: i32) -> i32 {
    %c0_i32 = arith.constant 0 : i32
    %c0_i32_0 = arith.constant 0 : i32
    return %c0_i32 : i32
  }
  func.func @transform_2(%arg0: i32, %arg1: i32) -> (i32, i32, i32, i32) {
    %c0_i32 = arith.constant 0 : i32
    %c0_i32_0 = arith.constant 0 : i32
    %c0_i32_1 = arith.constant 0 : i32
    return %arg0, %c0_i32, %arg1, %c0_i32_0 : i32, i32, i32, i32
  }
  func.func @transform_3(%arg0: i32, %arg1: i32) -> (i32, i32, i32, i32) {
    %c0_i32 = arith.constant 0 : i32
    %c0_i32_0 = arith.constant 0 : i32
    %c0_i32_1 = arith.constant 0 : i32
    return %arg0, %c0_i32, %arg1, %c0_i32_0 : i32, i32, i32, i32
  }
}

</mosaic_0001>

<bundles_post_ra>
// kernel: outconv_pallas.1
= control target key start
LH: loop header
LB: loop body
LE: loop exit
PB: predicated region body
PF: predicated region fallthrough
CT: control target
= control target key end

     0   :  { %8 = vsyncpa [#allocation3], 0  ;;  %s629_s0 = inlined_call_operand.vmem [shape: f32[12], index: 0, kind: input, shape index: {}]   ;;  %s630_s1 = inlined_call_operand.vmem [shape: f32[3], index: 1, kind: input, shape index: {}]   ;;  %s631_s2 = inlined_call_operand.vmem [shape: f32[2,4,8,128], index: 2, kind: input, shape index: {}]   ;;  %s632_s3 = inlined_call_operand.vmem [shape: f32[2,3,8,128], index: 3, kind: output, shape index: {}]  }
   0x1   :  { %9 = vsyncpa [#allocation5], 0  ;;  %s564_s12 = smov 0   ;;  %s566_s13 = smov 0  }
   0x2   :  { %s568_s14 = smov 0  }
   0x3 LB: > { %s401_s15 = sadd.s32 4294967295, %s540_s14   ;;  %s27_s16 = sadd.s32 1, %s536_s13  ;;  %s540_s14 = sphi %s568_s14, %s15_s14   ;;  %s536_s13 = sphi %s566_s13, %s635_s13   ;;  %s532_s12 = sphi %s564_s12, %s634_s12  }
   0x4   : > { %p29_p0 = scmp.ge.s32.totalorder %s27_s16, 2  ;;  %p403_p1 = scmp.ge.s32.totalorder %s540_s14, 1 }
   0x5   : > { %p130_p2 = scmp.lt.s32.totalorder %s540_s14, 3  ;;  %p585_p4 = scmp.eq.s32.totalorder %s401_s15, 0 }
   0x6   : > { %s637_s16 = smov (%p29_p0, %s27_s16), 0  ;;  %s142_s20 = sshll.u32 %s629_s0, 4  ;;  %s143_s20 = int_to_ptr.vmem [resolvable:$true] %s142_s20 }
   0x7   : > { %p131_p3 = pnand %p403_p1, %p130_p2  ;;  %s152_s23 = sshll.u32 %s630_s1, 4  ;;  %s153_s23 = int_to_ptr.vmem [resolvable:$true] %s152_s23 }
   0x8   : > { %s542_s24 = smov [#allocation2]   ;;  %s543_s25 = smov [#allocation4]  }
   0x9   : > { %p443_p5 = pneg %p131_p3 }
   0xa   : > { %176 = sbr.rel (%p131_p3) target bundleno = 49 (0x31), region = 32 }
   0xb   : > { %p444_p6 = pnand %p585_p4, %p443_p5 }
   0xd   : > { %446 = dma.vmem_to_smem (!%p444_p6), %s143_s20, 16, %s542_s24, [#allocation3]  }
   0xe   : > { %449 = dma.vmem_to_smem (!%p444_p6), %s153_s23, 16, %s543_s25, [#allocation5]  }
   0xf   : > { %523 = dma.done.wait (%p585_p4), [#allocation3], 16  }
  0x10   : > { %525 = vsyncadd (%p585_p4), [#allocation3], 4294967280 }
  0x11   : > { %527 = dma.done.wait (%p585_p4), [#allocation5], 16  }
  0x12   : > { %529 = vsyncadd (%p585_p4), [#allocation5], 4294967280 }
  0x13   : > { %188 = sfence }
  0x14   : > { %p213_p7 = scmp.lt.s32.totalorder %s532_s12, 1  ;;  %s236_s26 = sld [smem:[#allocation4]] }
  0x15   : > { %s237_s27 = sld [smem:[#allocation2]] }
  0x16   : > { %s639_s12 = smov (!%p213_p7, %s532_s12), 1  ;;  %s416_s28 = sld [smem:[#allocation2 + $0x1]] }
  0x17   : > { %s433_s29 = sshll.u32 %s639_s12, 5  ;;  %s417_s6 = sld [smem:[#allocation2 + $0x2]] }
  0x18   : > { %s220_s5 = scalar_lea.vmem %s631_s2, %s433_s29  ;;  %s418_s7 = sld [smem:[#allocation2 + $0x3]] }
  0x19   : > { %v229_v0 = vld [vmem:[%s220_s5] sm:$0xff]  ;;  %v413_v1 = vld [vmem:[%s220_s5 + $0x8] sm:$0xff]  ;;  %s613_s8 = sld [smem:[#allocation4 + $0x1]]  ;;  %v414_v5 = vld [vmem:[%s220_s5 + $0x10] sm:$0xff]  ;;  %s434_s15 = smul.u32 24, %s639_s12 }
  0x1a   : > { %v240_v3 = vstv %s236_s26  ;;  %s420_s9 = sld [smem:[#allocation2 + $0x4]]  ;;  %v415_v7 = vld [vmem:[%s220_s5 + $0x18] sm:$0xff] }
  0x1b   : > { %v238_v2 = vstv %s237_s27  ;;  %s421_s10 = sld [smem:[#allocation2 + $0x5]]  ;;  %s228_s23 = scalar_lea.vmem %s632_s3, %s434_s15 }
  0x1c   : > { %v239_v4 = vmul.f32 %v238_v2, %v229_v0  ;;  %v243_v6 = vstv %s416_s28  ;;  %s422_s11 = sld [smem:[#allocation2 + $0x6]] }
  0x1d   : > { %v244_v9 = vmul.f32 %v413_v1, %v243_v6  ;;  %v247_v10 = vstv %s417_s6  ;;  %s423_s17 = sld [smem:[#allocation2 + $0x7]] }
  0x1e   : > { %v241_v8 = vadd.f32 %v240_v3, %v239_v4  ;;  %v248_v12 = vmul.f32 %v414_v5, %v247_v10  ;;  %v251_v13 = vstv %s418_s7  ;;  %s425_s18 = sld [smem:[#allocation4 + $0x2]] }
  0x1f   : > { %v252_v14 = vmul.f32 %v415_v7, %v251_v13  ;;  %s426_s19 = sld [smem:[#allocation2 + $0x8]]  ;;  %v259_v17 = vstv %s613_s8 }
  0x20   : > { %v245_v11 = vadd.f32 %v244_v9, %v241_v8  ;;  %v257_v16 = vstv %s420_s9  ;;  %s427_s20 = sld [smem:[#allocation2 + $0x9]] }
  0x21   : > { %v258_v18 = vmul.f32 %v257_v16, %v229_v0  ;;  %v262_v19 = vstv %s421_s10  ;;  %s428_s24 = sld [smem:[#allocation2 + $0xa]] }
  0x22   : > { %v249_v15 = vadd.f32 %v248_v12, %v245_v11  ;;  %v263_v21 = vmul.f32 %v413_v1, %v262_v19  ;;  %v266_v22 = vstv %s422_s11  ;;  %s429_s12 = sld [smem:[#allocation2 + $0xb]] }
  0x23   : > { %v260_v23 = vadd.f32 %v259_v17, %v258_v18  ;;  %v267_v24 = vmul.f32 %v414_v5, %v266_v22  ;;  %v270_v25 = vstv %s423_s17 }
  0x24   : > { %v253_v20 = vadd.f32 %v252_v14, %v249_v15  ;;  %v271_v27 = vmul.f32 %v415_v7, %v270_v25  ;;  %v279_v29 = vstv %s425_s18 }
  0x25   : > { %v264_v26 = vadd.f32 %v263_v21, %v260_v23  ;;  %v277_v28 = vstv %s426_s19 }
  0x26   : > { %254 = vst [vmem:[%s228_s23] sm:$0xff] %v253_v20  ;;  %v278_v30 = vmul.f32 %v277_v28, %v229_v0  ;;  %v282_v31 = vstv %s427_s20 }
  0x27   : > { %v268_v32 = vadd.f32 %v267_v24, %v264_v26  ;;  %v283_v33 = vmul.f32 %v413_v1, %v282_v31  ;;  %v286_v34 = vstv %s428_s24 }
  0x28   : > { %v280_v35 = vadd.f32 %v279_v29, %v278_v30  ;;  %v287_v36 = vmul.f32 %v414_v5, %v286_v34  ;;  %v290_v37 = vstv %s429_s12 }
  0x29   : > { %v272_v38 = vadd.f32 %v271_v27, %v268_v32  ;;  %v291_v40 = vmul.f32 %v415_v7, %v290_v37 }
  0x2a   : > { %v284_v39 = vadd.f32 %v283_v33, %v280_v35 }
  0x2b   : > { %424 = vst [vmem:[%s228_s23 + $0x8] sm:$0xff] %v272_v38 }
  0x2c   : > { %v288_v41 = vadd.f32 %v287_v36, %v284_v39 }
  0x2e   : > { %v292_v42 = vadd.f32 %v291_v40, %v288_v41 }
  0x30   : > { %430 = vst [vmem:[%s228_s23 + $0x10] sm:$0xff] %v292_v42 }
  0x31 PF: > { %s15_s14 = sadd.s32 1, %s540_s14   ;;  %s634_s12 = smov %s536_s13 }
  0x32   : > { %p12_p8 = scmp.ge.s32.totalorder %s15_s14, 4   ;;  %s635_s13 = smov %s637_s16 }
  0x34   :  { %14 = sbr.rel (!%p12_p8) target bundleno = 3 (0x3), region = 76 }
  0x39   :  { %322 = vsyncpa [#allocation3], 1 }
  0x3a   :  { %324 = vsyncpa [#allocation3 + $0x1], 1 }
  0x3b   :  { %325 = vsyncpa [#allocation5], 1 }

</bundles_post_ra>
